<compile_context>
chip_gen: v5e
topology: v5e:2x2
jax: 0.10.0
libtpu: 0.0.40
codegen_flags: <defaults>
</compile_context>

<pallas_src>
import functools

import jax
import jax.numpy as jnp
from jax.experimental import pallas as pl
from jax.experimental.pallas import tpu as pltpu

LEAKY_SLOPE = 0.3


# ----------------------------------------------------------------------------
# Fused kernel: num_blocks external-attention blocks + (folded) DeepFc.
# Processes a (Bp, N, D) slab per grid step (Bp = B for the single-step grid,
# Bp = 1 for the v7x batch-parallel grid).
# ----------------------------------------------------------------------------
def interafl_fused_kernel(x_ref, *refs, num_blocks, Bp, N, D, d_m):
    o_ref = refs[-1]
    w12_ref, b12_ref, w3_ref, b3_ref = refs[2 * num_blocks: 2 * num_blocks + 4]

    # Fold batch into matmul rows (leading-dim fold only -> layout-free).
    out2 = x_ref[...].astype(jnp.float32).reshape(Bp * N, D)            # (Bp*N, D)

    for blk in range(num_blocks):                                       # static unroll
        mk_t = refs[2 * blk][...]                                       # (D, d_m)  f32
        mv_t = refs[2 * blk + 1][...]                                   # (d_m, D)  bf16

        # attention scores: precision-sensitive (weights std=0.001) -> keep f32
        a2 = jnp.dot(out2, mk_t, preferred_element_type=jnp.float32)    # (Bp*N, d_m)
        a3 = a2.reshape(Bp, N, d_m)                                     # N % 8 == 0 -> free

        # softmax over dim=1 (the N axis), numerically stabilized, EXACT divisions
        a3 = a3 - jnp.max(a3, axis=1, keepdims=True)
        p = jnp.exp(a3)
        p = p / jnp.sum(p, axis=1, keepdims=True)
        # second normalization: divide by sum over dim=2 (the d_m axis)
        p = p / jnp.sum(p, axis=2, keepdims=True)

        # value projection: bf16 MXU operands, f32 accumulation
        out2 = jnp.dot(p.reshape(Bp * N, d_m).astype(mv_t.dtype), mv_t,
                       preferred_element_type=jnp.float32)              # (Bp*N, D)

    # PyTorch does out.squeeze() here; with B,N,D > 1 it is a no-op (shape is
    # restored in the wrapper), and DeepFc acts on the last dim either way.
    # DeepFc with the first two linears folded into (w12, b12):
    h = jnp.dot(out2.astype(w12_ref.dtype), w12_ref[...],
                preferred_element_type=jnp.float32) + b12_ref[...]      # (Bp*N, 2D)
    h = jnp.where(h >= 0.0, h, LEAKY_SLOPE * h)
    h = jnp.dot(h.astype(w3_ref.dtype), w3_ref[...],
                preferred_element_type=jnp.float32) + b3_ref[...]       # (Bp*N, D)
    h = jnp.where(h >= 0.0, h, LEAKY_SLOPE * h)

    o_ref[...] = h.astype(o_ref.dtype)


def interafl_forward(x, params, *, batch_parallel=None):
    """x: (B, N, D); params: {'blocks': [{'mk_w','mv_w'}...], 'fc': {...}} (PyTorch convention)."""
    B, N, D = x.shape
    blocks = params["blocks"]
    num_blocks = len(blocks)
    d_m = blocks[0]["mk_w"].shape[0]
    fc = params["fc"]

    # TODO(synk): PyTorch's out.squeeze() only changes shapes if B, N, or D is 1;
    # for the non-degenerate case here it is a no-op and DeepFc math is identical.
    assert B > 1 and N > 1 and D > 1, "squeeze() semantics differ for size-1 dims"
    # Keep the (Bp*N, d_m) <-> (Bp, N, d_m) reshapes layout-free (sublane fold).
    assert N % 8 == 0, "N must be a multiple of 8 to avoid per-block relayouts"

    # --- fold DeepFc linear1+linear2 (no nonlinearity in between): exact identity
    #     h = (x @ W1^T + b1) @ W2^T + b2 = x @ (W1^T W2^T) + (b1 @ W2^T + b2)
    w12 = fc["w1"].T @ fc["w2"].T                          # (D, 2D)
    b12 = fc["b1"] @ fc["w2"].T + fc["b2"]                 # (2D,)

    mxu_dtype = jnp.bfloat16
    operands = [x]
    for bp in blocks:
        operands.append(bp["mk_w"].T.astype(jnp.float32))  # (D, d_m)  precision-sensitive -> f32
        operands.append(bp["mv_w"].T.astype(mxu_dtype))    # (d_m, D)  bf16 MXU operand
    operands += [w12.astype(mxu_dtype), b12.reshape(1, -1).astype(jnp.float32),
                 fc["w3"].T.astype(mxu_dtype), fc["b3"].reshape(1, -1).astype(jnp.float32)]

    # --- v7x: 2 TensorCores -> parallel batch grid; v5e/v6e: single grid step.
    if batch_parallel is None:
        try:
            kind = jax.devices()[0].device_kind.lower()
        except Exception:  # pragma: no cover - detection is best-effort
            kind = ""
        batch_parallel = ("v7" in kind or "tpu7" in kind) and B > 1
    n_grid = B if batch_parallel else 1
    Bp = B // n_grid

    x_spec = pl.BlockSpec((Bp, N, D), lambda b: (b, 0, 0))
    weight_specs = [pl.BlockSpec(a.shape, (lambda b, n=a.ndim: (0,) * n))
                    for a in operands[1:]]                 # constant -> VMEM-resident
    out_spec = pl.BlockSpec((Bp * N, D), lambda b: (b, 0))

    flops = B * N * (num_blocks * 4 * D * d_m + 8 * D * D)
    bytes_accessed = sum(int(a.size) * a.dtype.itemsize for a in operands) \
        + B * N * D * x.dtype.itemsize
    cost = pl.CostEstimate(flops=flops,
                           transcendentals=B * N * d_m * num_blocks,
                           bytes_accessed=bytes_accessed)

    kernel = functools.partial(interafl_fused_kernel,
                               num_blocks=num_blocks, Bp=Bp, N=N, D=D, d_m=d_m)

    out2d = pl.pallas_call(
        kernel,
        out_shape=jax.ShapeDtypeStruct((B * N, D), x.dtype),
        grid=(n_grid,),
        in_specs=[x_spec] + weight_specs,
        out_specs=out_spec,
        cost_estimate=cost,
        compiler_params=pltpu.CompilerParams(
            dimension_semantics=(("parallel",) if batch_parallel else ("arbitrary",))),
    )(*operands)

    return out2d.reshape(B, N, D)


# ----------------------------------------------------------------------------
# Pure-JAX reference (mirrors the PyTorch forward) for a correctness check.
# ----------------------------------------------------------------------------
def interafl_reference(x, params):
    out = x
    for bp in params["blocks"]:
        attn = jnp.einsum("bnd,sd->bns", out, bp["mk_w"])
        attn = jax.nn.softmax(attn, axis=1)
        attn = attn / jnp.sum(attn, axis=2, keepdims=True)
        out = jnp.einsum("bns,ds->bnd", attn, bp["mv_w"])
    out = jnp.squeeze(out)
    fc = params["fc"]
    h = out @ fc["w1"].T + fc["b1"]
    h = h @ fc["w2"].T + fc["b2"]
    h = jnp.where(h >= 0.0, h, LEAKY_SLOPE * h)
    h = h @ fc["w3"].T + fc["b3"]
    h = jnp.where(h >= 0.0, h, LEAKY_SLOPE * h)
    return h


# ----------------------------------------------------------------------------
# Deterministic synthetic parameters (PyTorch weight shapes / init style)
# ----------------------------------------------------------------------------
def init_params(key, D, num_blocks, d_m):
    def nrm(k, shape, scale):
        return (scale * jax.random.normal(k, shape)).astype(jnp.float32)

    blocks = []
    for _ in range(num_blocks):
        key, k1, k2 = jax.random.split(key, 3)
        blocks.append(dict(
            mk_w=nrm(k1, (d_m, D), 0.001),   # interAFL_Block.init_weights: normal(std=0.001), no bias
            mv_w=nrm(k2, (D, d_m), 0.001),
        ))
    key, k1, k2, k3, k4, k5, k6 = jax.random.split(key, 7)
    fc = dict(
        w1=nrm(k1, (2 * D, D), 0.05), b1=nrm(k2, (2 * D,), 0.01),
        w2=nrm(k3, (2 * D, 2 * D), 0.05), b2=nrm(k4, (2 * D,), 0.01),
        w3=nrm(k5, (D, 2 * D), 0.05), b3=nrm(k6, (D,), 0.01),
    )
    return dict(blocks=blocks, fc=fc)


if __name__ == "__main__":
    # small shapes: batch=2, seq (num tokens/regions)=8, input_dim=32, d_m=16
    B, N, D = 2, 8, 32
    NUM_BLOCKS = 2      # args.NO_InterAFL
    D_M = 16            # d_m of interAFL_Block

    key = jax.random.PRNGKey(0)
    kx, kp = jax.random.split(key)
    x = jax.random.normal(kx, (B, N, D), dtype=jnp.float32)
    params = init_params(kp, D, NUM_BLOCKS, D_M)

    out = interafl_forward(x, params)
    out = jax.block_until_ready(out)
    assert out.shape == (B, N, D)

    ref = interafl_reference(x, params)
    max_err = float(jnp.max(jnp.abs(out - ref)))
    assert max_err < 2e-3, f"max abs error vs reference: {max_err}"

    print("KERNEL_OK")
</pallas_src>

<mosaic_0001>
module attributes {stable_mosaic.version = 11 : i64} {
  func.func @interafl_fused_kernel(%arg0: i32, %arg1: memref<2x8x32xf32, #tpu.memory_space<vmem>>, %arg2: memref<32x16xf32, #tpu.memory_space<vmem>>, %arg3: memref<16x32xbf16, #tpu.memory_space<vmem>>, %arg4: memref<32x16xf32, #tpu.memory_space<vmem>>, %arg5: memref<16x32xbf16, #tpu.memory_space<vmem>>, %arg6: memref<32x64xbf16, #tpu.memory_space<vmem>>, %arg7: memref<1x64xf32, #tpu.memory_space<vmem>>, %arg8: memref<64x32xbf16, #tpu.memory_space<vmem>>, %arg9: memref<1x32xf32, #tpu.memory_space<vmem>>, %arg10: memref<16x32xf32, #tpu.memory_space<vmem>>) attributes {dimension_semantics = [#tpu.dimension_semantics<arbitrary>], iteration_bounds = array<i64: 1>, scalar_prefetch = 0 : i64, scratch_operands = 0 : i64, tpu.core_type = #tpu.core_type<tc>, window_params = [{transform_indices = @transform_0, window_bounds = array<i64: 2, 8, 32>}, {pipeline_mode = #tpu.pipeline_mode<synchronous>, transform_indices = @transform_1, window_bounds = array<i64: 32, 16>}, {pipeline_mode = #tpu.pipeline_mode<synchronous>, transform_indices = @transform_2, window_bounds = array<i64: 16, 32>}, {pipeline_mode = #tpu.pipeline_mode<synchronous>, transform_indices = @transform_3, window_bounds = array<i64: 32, 16>}, {pipeline_mode = #tpu.pipeline_mode<synchronous>, transform_indices = @transform_4, window_bounds = array<i64: 16, 32>}, {pipeline_mode = #tpu.pipeline_mode<synchronous>, transform_indices = @transform_5, window_bounds = array<i64: 32, 64>}, {pipeline_mode = #tpu.pipeline_mode<synchronous>, transform_indices = @transform_6, window_bounds = array<i64: 1, 64>}, {pipeline_mode = #tpu.pipeline_mode<synchronous>, transform_indices = @transform_7, window_bounds = array<i64: 64, 32>}, {pipeline_mode = #tpu.pipeline_mode<synchronous>, transform_indices = @transform_8, window_bounds = array<i64: 1, 32>}, {transform_indices = @transform_9, window_bounds = array<i64: 16, 32>}]} {
    %c0 = arith.constant 0 : index
    %c0_0 = arith.constant 0 : index
    %c0_1 = arith.constant 0 : index
    %0 = vector.load %arg1[%c0, %c0_0, %c0_1] : memref<2x8x32xf32, #tpu.memory_space<vmem>>, vector<2x8x32xf32>
    %1 = vector.shape_cast %0 : vector<2x8x32xf32> to vector<16x32xf32>
    %c0_2 = arith.constant 0 : index
    %c0_3 = arith.constant 0 : index
    %2 = vector.load %arg2[%c0_2, %c0_3] : memref<32x16xf32, #tpu.memory_space<vmem>>, vector<32x16xf32>
    %c0_4 = arith.constant 0 : index
    %c0_5 = arith.constant 0 : index
    %3 = vector.load %arg3[%c0_4, %c0_5] : memref<16x32xbf16, #tpu.memory_space<vmem>>, vector<16x32xbf16>
    %cst = arith.constant dense<0.000000e+00> : vector<16x16xf32>
    %4 = tpu.matmul %1, %2, %cst {dimension_numbers = #tpu.dot_dimension_numbers<[1], [0], [0], [1], [0, 0, 1, 1], [], []>} : vector<16x32xf32>, vector<32x16xf32>, vector<16x16xf32> -> vector<16x16xf32>
    %5 = vector.shape_cast %4 : vector<16x16xf32> to vector<2x8x16xf32>
    %cst_6 = arith.constant dense<0xFF800000> : vector<2x16xf32>
    %6 = vector.multi_reduction <maximumf>, %5, %cst_6 [1] : vector<2x8x16xf32> to vector<2x16xf32>
    %7 = vector.shape_cast %6 : vector<2x16xf32> to vector<2x1x16xf32>
    %8 = vector.broadcast %7 : vector<2x1x16xf32> to vector<2x8x16xf32>
    %9 = arith.subf %5, %8 : vector<2x8x16xf32>
    %10 = math.exp %9 : vector<2x8x16xf32>
    %cst_7 = arith.constant dense<0.000000e+00> : vector<2x16xf32>
    %11 = vector.multi_reduction <add>, %10, %cst_7 [1] : vector<2x8x16xf32> to vector<2x16xf32>
    %12 = vector.shape_cast %11 : vector<2x16xf32> to vector<2x1x16xf32>
    %13 = vector.broadcast %12 : vector<2x1x16xf32> to vector<2x8x16xf32>
    %14 = arith.divf %10, %13 : vector<2x8x16xf32>
    %cst_8 = arith.constant dense<0.000000e+00> : vector<2x8xf32>
    %15 = vector.multi_reduction <add>, %14, %cst_8 [2] : vector<2x8x16xf32> to vector<2x8xf32>
    %16 = vector.shape_cast %15 : vector<2x8xf32> to vector<2x8x1xf32>
    %17 = vector.broadcast %16 : vector<2x8x1xf32> to vector<2x8x16xf32>
    %18 = arith.divf %14, %17 : vector<2x8x16xf32>
    %19 = vector.shape_cast %18 : vector<2x8x16xf32> to vector<16x16xf32>
    %20 = arith.truncf %19 : vector<16x16xf32> to vector<16x16xbf16>
    %cst_9 = arith.constant dense<0.000000e+00> : vector<16x32xf32>
    %21 = tpu.matmul %20, %3, %cst_9 {dimension_numbers = #tpu.dot_dimension_numbers<[1], [0], [0], [1], [0, 0, 1, 1], [], []>} : vector<16x16xbf16>, vector<16x32xbf16>, vector<16x32xf32> -> vector<16x32xf32>
    %c0_10 = arith.constant 0 : index
    %c0_11 = arith.constant 0 : index
    %22 = vector.load %arg4[%c0_10, %c0_11] : memref<32x16xf32, #tpu.memory_space<vmem>>, vector<32x16xf32>
    %c0_12 = arith.constant 0 : index
    %c0_13 = arith.constant 0 : index
    %23 = vector.load %arg5[%c0_12, %c0_13] : memref<16x32xbf16, #tpu.memory_space<vmem>>, vector<16x32xbf16>
    %cst_14 = arith.constant dense<0.000000e+00> : vector<16x16xf32>
    %24 = tpu.matmul %21, %22, %cst_14 {dimension_numbers = #tpu.dot_dimension_numbers<[1], [0], [0], [1], [0, 0, 1, 1], [], []>} : vector<16x32xf32>, vector<32x16xf32>, vector<16x16xf32> -> vector<16x16xf32>
    %25 = vector.shape_cast %24 : vector<16x16xf32> to vector<2x8x16xf32>
    %cst_15 = arith.constant dense<0xFF800000> : vector<2x16xf32>
    %26 = vector.multi_reduction <maximumf>, %25, %cst_15 [1] : vector<2x8x16xf32> to vector<2x16xf32>
    %27 = vector.shape_cast %26 : vector<2x16xf32> to vector<2x1x16xf32>
    %28 = vector.broadcast %27 : vector<2x1x16xf32> to vector<2x8x16xf32>
    %29 = arith.subf %25, %28 : vector<2x8x16xf32>
    %30 = math.exp %29 : vector<2x8x16xf32>
    %cst_16 = arith.constant dense<0.000000e+00> : vector<2x16xf32>
    %31 = vector.multi_reduction <add>, %30, %cst_16 [1] : vector<2x8x16xf32> to vector<2x16xf32>
    %32 = vector.shape_cast %31 : vector<2x16xf32> to vector<2x1x16xf32>
    %33 = vector.broadcast %32 : vector<2x1x16xf32> to vector<2x8x16xf32>
    %34 = arith.divf %30, %33 : vector<2x8x16xf32>
    %cst_17 = arith.constant dense<0.000000e+00> : vector<2x8xf32>
    %35 = vector.multi_reduction <add>, %34, %cst_17 [2] : vector<2x8x16xf32> to vector<2x8xf32>
    %36 = vector.shape_cast %35 : vector<2x8xf32> to vector<2x8x1xf32>
    %37 = vector.broadcast %36 : vector<2x8x1xf32> to vector<2x8x16xf32>
    %38 = arith.divf %34, %37 : vector<2x8x16xf32>
    %39 = vector.shape_cast %38 : vector<2x8x16xf32> to vector<16x16xf32>
    %40 = arith.truncf %39 : vector<16x16xf32> to vector<16x16xbf16>
    %cst_18 = arith.constant dense<0.000000e+00> : vector<16x32xf32>
    %41 = tpu.matmul %40, %23, %cst_18 {dimension_numbers = #tpu.dot_dimension_numbers<[1], [0], [0], [1], [0, 0, 1, 1], [], []>} : vector<16x16xbf16>, vector<16x32xbf16>, vector<16x32xf32> -> vector<16x32xf32>
    %42 = arith.truncf %41 : vector<16x32xf32> to vector<16x32xbf16>
    %c0_19 = arith.constant 0 : index
    %c0_20 = arith.constant 0 : index
    %43 = vector.load %arg6[%c0_19, %c0_20] : memref<32x64xbf16, #tpu.memory_space<vmem>>, vector<32x64xbf16>
    %cst_21 = arith.constant dense<0.000000e+00> : vector<16x64xf32>
    %44 = tpu.matmul %42, %43, %cst_21 {dimension_numbers = #tpu.dot_dimension_numbers<[1], [0], [0], [1], [0, 0, 1, 1], [], []>} : vector<16x32xbf16>, vector<32x64xbf16>, vector<16x64xf32> -> vector<16x64xf32>
    %c0_22 = arith.constant 0 : index
    %c0_23 = arith.constant 0 : index
    %45 = vector.load %arg7[%c0_22, %c0_23] : memref<1x64xf32, #tpu.memory_space<vmem>>, vector<1x64xf32>
    %46 = vector.broadcast %45 : vector<1x64xf32> to vector<16x64xf32>
    %47 = arith.addf %44, %46 : vector<16x64xf32>
    %cst_24 = arith.constant 0.000000e+00 : f32
    %48 = vector.broadcast %cst_24 : f32 to vector<16x64xf32>
    %49 = arith.cmpf oge, %47, %48 : vector<16x64xf32>
    %cst_25 = arith.constant 3.000000e-01 : f32
    %50 = vector.broadcast %cst_25 : f32 to vector<16x64xf32>
    %51 = arith.mulf %50, %47 : vector<16x64xf32>
    %52 = arith.select %49, %47, %51 : vector<16x64xi1>, vector<16x64xf32>
    %53 = arith.truncf %52 : vector<16x64xf32> to vector<16x64xbf16>
    %c0_26 = arith.constant 0 : index
    %c0_27 = arith.constant 0 : index
    %54 = vector.load %arg8[%c0_26, %c0_27] : memref<64x32xbf16, #tpu.memory_space<vmem>>, vector<64x32xbf16>
    %cst_28 = arith.constant dense<0.000000e+00> : vector<16x32xf32>
    %55 = tpu.matmul %53, %54, %cst_28 {dimension_numbers = #tpu.dot_dimension_numbers<[1], [0], [0], [1], [0, 0, 1, 1], [], []>} : vector<16x64xbf16>, vector<64x32xbf16>, vector<16x32xf32> -> vector<16x32xf32>
    %c0_29 = arith.constant 0 : index
    %c0_30 = arith.constant 0 : index
    %56 = vector.load %arg9[%c0_29, %c0_30] : memref<1x32xf32, #tpu.memory_space<vmem>>, vector<1x32xf32>
    %57 = vector.broadcast %56 : vector<1x32xf32> to vector<16x32xf32>
    %58 = arith.addf %55, %57 : vector<16x32xf32>
    %cst_31 = arith.constant 0.000000e+00 : f32
    %59 = vector.broadcast %cst_31 : f32 to vector<16x32xf32>
    %60 = arith.cmpf oge, %58, %59 : vector<16x32xf32>
    %cst_32 = arith.constant 3.000000e-01 : f32
    %61 = vector.broadcast %cst_32 : f32 to vector<16x32xf32>
    %62 = arith.mulf %61, %58 : vector<16x32xf32>
    %63 = arith.select %60, %58, %62 : vector<16x32xi1>, vector<16x32xf32>
    %c0_33 = arith.constant 0 : index
    %c0_34 = arith.constant 0 : index
    %64 = vector.load %arg10[%c0_33, %c0_34] : memref<16x32xf32, #tpu.memory_space<vmem>>, vector<16x32xf32>
    tpu.vector_store %arg10[%c0_33, %c0_34], %63 {strides = array<i32>} : memref<16x32xf32, #tpu.memory_space<vmem>>, vector<16x32xf32>,
    return
  }
  func.func @transform_0(%arg0: i32) -> (i32, i32, i32) {
    %c0_i32 = arith.constant 0 : i32
    %c0_i32_0 = arith.constant 0 : i32
    %c0_i32_1 = arith.constant 0 : i32
    return %arg0, %c0_i32, %c0_i32_0 : i32, i32, i32
  }
  func.func @transform_1(%arg0: i32) -> (i32, i32) {
    %c0_i32 = arith.constant 0 : i32
    %c0_i32_0 = arith.constant 0 : i32
    %c0_i32_1 = arith.constant 0 : i32
    return %c0_i32, %c0_i32_0 : i32, i32
  }
  func.func @transform_2(%arg0: i32) -> (i32, i32) {
    %c0_i32 = arith.constant 0 : i32
    %c0_i32_0 = arith.constant 0 : i32
    %c0_i32_1 = arith.constant 0 : i32
    return %c0_i32, %c0_i32_0 : i32, i32
  }
  func.func @transform_3(%arg0: i32) -> (i32, i32) {
    %c0_i32 = arith.constant 0 : i32
    %c0_i32_0 = arith.constant 0 : i32
    %c0_i32_1 = arith.constant 0 : i32
    return %c0_i32, %c0_i32_0 : i32, i32
  }
  func.func @transform_4(%arg0: i32) -> (i32, i32) {
    %c0_i32 = arith.constant 0 : i32
    %c0_i32_0 = arith.constant 0 : i32
    %c0_i32_1 = arith.constant 0 : i32
    return %c0_i32, %c0_i32_0 : i32, i32
  }
  func.func @transform_5(%arg0: i32) -> (i32, i32) {
    %c0_i32 = arith.constant 0 : i32
    %c0_i32_0 = arith.constant 0 : i32
    %c0_i32_1 = arith.constant 0 : i32
    return %c0_i32, %c0_i32_0 : i32, i32
  }
  func.func @transform_6(%arg0: i32) -> (i32, i32) {
    %c0_i32 = arith.constant 0 : i32
    %c0_i32_0 = arith.constant 0 : i32
    %c0_i32_1 = arith.constant 0 : i32
    return %c0_i32, %c0_i32_0 : i32, i32
  }
  func.func @transform_7(%arg0: i32) -> (i32, i32) {
    %c0_i32 = arith.constant 0 : i32
    %c0_i32_0 = arith.constant 0 : i32
    %c0_i32_1 = arith.constant 0 : i32
    return %c0_i32, %c0_i32_0 : i32, i32
  }
  func.func @transform_8(%arg0: i32) -> (i32, i32) {
    %c0_i32 = arith.constant 0 : i32
    %c0_i32_0 = arith.constant 0 : i32
    %c0_i32_1 = arith.constant 0 : i32
    return %c0_i32, %c0_i32_0 : i32, i32
  }
  func.func @transform_9(%arg0: i32) -> (i32, i32) {
    %c0_i32 = arith.constant 0 : i32
    %c0_i32_0 = arith.constant 0 : i32
    return %arg0, %c0_i32 : i32, i32
  }
}

</mosaic_0001>

<bundles_post_ra>
// kernel: tpu_custom_call.1
= control target key start
LH: loop header
LB: loop body
LE: loop exit
PB: predicated region body
PF: predicated region fallthrough
CT: control target
= control target key end

     0   :  { %s721_s0 = inlined_call_operand.vmem [shape: f32[2,8,32], index: 0, kind: input, shape index: {}]   ;;  %s722_s1 = inlined_call_operand.vmem [shape: f32[32,16], index: 1, kind: input, shape index: {}]   ;;  %s723_s2 = inlined_call_operand.vmem [shape: bf16[16,32], index: 2, kind: input, shape index: {}]   ;;  %s724_s3 = inlined_call_operand.vmem [shape: f32[32,16], index: 3, kind: input, shape index: {}]   ;;  %s725_s4 = inlined_call_operand.vmem [shape: bf16[16,32], index: 4, kind: input, shape index: {}]   ;;  %s726_s5 = inlined_call_operand.vmem [shape: bf16[32,64], index: 5, kind: input, shape index: {}]   ;;  %s727_s6 = inlined_call_operand.vmem [shape: f32[1,64], index: 6, kind: input, shape index: {}]   ;;  %s728_s7 = inlined_call_operand.vmem [shape: bf16[64,32], index: 7, kind: input, shape index: {}]   ;;  %s729_s8 = inlined_call_operand.vmem [shape: f32[1,32], index: 8, kind: input, shape index: {}]   ;;  %s730_s9 = inlined_call_operand.hbm [shape: f32[16,32], index: 9, kind: output, shape index: {}]  }
   0x1   :  { %v39_v0 = vld [vmem:[%s722_s1 + $0x18] sm:$0xff]  ;;  %v38_v1 = vld [vmem:[%s722_s1 + $0x10] sm:$0xff]  ;;  %v37_v2 = vld [vmem:[%s722_s1 + $0x8] sm:$0xff] }
   0x2   :  { %61 = vmatpush.msra.mxu0 %v39_v0 }
   0x3   :  { %14 = vsyncpa [#allocation3], 0  ;;  %v36_v3 = vld [vmem:[%s722_s1] sm:$0xff]  ;;  %vm42_vm0 = vcmask 261120   ;;  %v35_v5 = vld [vmem:[%s721_s0 + $0x8] sm:$0xff]  ;;  %vm72_vm1 = vcmask 130048  }
   0x4   :  { %62 = vmatpush.msra.mxu0 %v38_v1  ;;  %v34_v4 = vld [vmem:[%s721_s0] sm:$0xff]  ;;  %s469_s22 = sshll.u32 %s730_s9, 4  ;;  %s586_s23 = smov 8   ;;  %s470_s22 = int_to_ptr.hbm [resolvable:$true] %s469_s22 }
   0x6   :  { %63 = vmatpush.msra.mxu0 %v37_v2  ;;  %v521_v2 = vld [vmem:[%s723_s2] sm:$0xff] }
   0x7   :  { %190 = vmatpush.bf16.msra.mxu1 %v521_v2 }
   0x8   :  { %64 = vmatpush.msra.mxu0 %v36_v3  ;;  %v200_v3 = vld [vmem:[%s724_s3 + $0x18] sm:$0xff] }
   0x9   :  { %481 = vmatmul.msk.f32.vlgmr.msra.gmra.mxu0 %vm42_vm0, %v34_v4  ;;  %v199_v4 = vld [vmem:[%s724_s3 + $0x10] sm:$0xff]  ;;  %221 = vmatpush.msra.mxu2 %v200_v3 }
   0xb   :  { %222 = vmatpush.msra.mxu2 %v199_v4 }
  0x11   :  { %482 = vmatmul.msk.f32.gmra.mxu0 %vm42_vm0, %v35_v5 }
  0x86   :  { %v66_v6 = vpop.f32.mrf.mxu0 }
  0x87   :  { %v73_v7 = vsel %vm72_vm1, %v66_v6, -inf }
  0x88   :  { %v74_v8 = vrot.slane %v73_v7, 4 }
  0x8a   :  { %v75_v9 = vmax.f32 %v73_v7, %v74_v8 }
  0x8c   :  { %v76_v10 = vrot.slane %v75_v9, 2 }
  0x8e   :  { %v77_v11 = vmax.f32 %v75_v9, %v76_v10  ;;  %v69_v12 = vpop.f32.mrf.mxu0 }
  0x8f   :  { %v80_v13 = vsel %vm72_vm1, %v69_v12, -inf }
  0x90   :  { %v78_v14 = vrot.slane %v77_v11, 1  ;;  %v81_v15 = vrot.slane %v80_v13, 4 }
  0x92   :  { %v79_v16 = vmax.f32 %v77_v11, %v78_v14  ;;  %v82_v17 = vmax.f32 %v80_v13, %v81_v15 }
  0x94   :  { %v87_v18 = vsub.f32 %v66_v6, %v79_v16  ;;  %v83_v19 = vrot.slane %v82_v17, 2  ;;  %v198_v6 = vld [vmem:[%s724_s3 + $0x8] sm:$0xff] }
  0x95   :  { %223 = vmatpush.msra.mxu2 %v198_v6 }
  0x96   :  { %v89_v20 = vmul.f32 1.442695, %v87_v18  ;;  %v84_v21 = vmax.f32 %v82_v17, %v83_v19 }
  0x98   :  { %534 = vpow2.f32 %v89_v20  ;;  %v85_v22 = vrot.slane %v84_v21, 1 }
  0x9a   :  { %v86_v23 = vmax.f32 %v84_v21, %v85_v22 }
  0x9c   :  { %v88_v24 = vsub.f32 %v69_v12, %v86_v23 }
  0x9e   :  { %v535_v25 = vpop.eup %534  ;;  %v91_v26 = vmul.f32 1.442695, %v88_v24 }
  0x9f   :  { %v93_v27 = vsel %vm72_vm1, %v535_v25, 0.0 }
  0xa0   :  { %v94_v28 = vrot.slane %v93_v27, 4  ;;  %536 = vpow2.f32 %v91_v26 }
  0xa2   :  { %v95_v29 = vadd.f32 %v94_v28, %v93_v27 }
  0xa4   :  { %v96_v30 = vrot.slane %v95_v29, 2 }
  0xa6   :  { %v537_v31 = vpop.eup %536  ;;  %v97_v32 = vadd.f32 %v96_v30, %v95_v29 }
  0xa7   :  { %v100_v33 = vsel %vm72_vm1, %v537_v31, 0.0 }
  0xa8   :  { %v98_v34 = vrot.slane %v97_v32, 1  ;;  %v101_v35 = vrot.slane %v100_v33, 4 }
  0xaa   :  { %v99_v36 = vadd.f32 %v98_v34, %v97_v32  ;;  %v102_v37 = vadd.f32 %v101_v35, %v100_v33 }
  0xac   :  { %538 = vrcp.f32 %v99_v36  ;;  %v103_v38 = vrot.slane %v102_v37, 2  ;;  %v118_v45 = vand.u32 2147483648, %v99_v36  ;;  %v116_v47 = vand.u32 2147483647, %v99_v36 }
  0xad   :  { %vm112_vm3 = vweird.f32 %v99_v36 }
  0xae   :  { %v104_v39 = vadd.f32 %v103_v38, %v102_v37  ;;  %v119_v50 = vor.u32 1.1754944e-38, %v118_v45  ;;  %vm117_vm5 = vcmp.eq.f32.partialorder %v116_v47, 8.507059e+37 }
  0xb0   :  { %v105_v40 = vrot.slane %v104_v39, 1 }
  0xb2   :  { %v539_v41 = vpop.eup %538  ;;  %v106_v42 = vadd.f32 %v105_v40, %v104_v39 }
  0xb3   :  { %v108_v43 = vmul.f32 %v539_v41, %v99_v36  ;;  %vm113_vm2 = vweird.f32 %v539_v41 }
  0xb4   :  { %540 = vrcp.f32 %v106_v42  ;;  %vm114_vm4 = vmor %vm112_vm3, %vm113_vm2  ;;  %v133_v56 = vand.u32 2147483648, %v106_v42  ;;  %v131_v59 = vand.u32 2147483647, %v106_v42  ;;  %vm127_vm7 = vweird.f32 %v106_v42 }
  0xb5   :  { %v109_v44 = vsub.f32 1.0, %v108_v43 }
  0xb6   :  { %v134_v61 = vor.u32 1.1754944e-38, %v133_v56  ;;  %vm132_vm9 = vcmp.eq.f32.partialorder %v131_v59, 8.507059e+37 }
  0xb7   :  { %v110_v46 = vmul.f32 %v539_v41, %v109_v44 }
  0xb9   :  { %v111_v48 = vadd.f32 %v539_v41, %v110_v46 }
  0xba   :  { %v541_v49 = vpop.eup %540 }
  0xbb   :  { %v115_v51 = vsel %vm114_vm4, %v539_v41, %v111_v48  ;;  %v123_v52 = vmul.f32 %v541_v49, %v106_v42  ;;  %vm128_vm6 = vweird.f32 %v541_v49 }
  0xbc   :  { %v120_v53 = vsel %vm117_vm5, %v119_v50, %v115_v51  ;;  %vm129_vm8 = vmor %vm127_vm7, %vm128_vm6 }
  0xbd   :  { %v121_v54 = vmul.f32 %v535_v25, %v120_v53  ;;  %v124_v55 = vsub.f32 1.0, %v123_v52 }
  0xbf   :  { %v137_v57 = vsel %vm72_vm1, %v121_v54, 0.0  ;;  %v125_v58 = vmul.f32 %v541_v49, %v124_v55 }
  0xc0   :  { %138 = vadd.xlane.f32.xlu0 %v137_v57 }
  0xc1   :  { %v126_v60 = vadd.f32 %v541_v49, %v125_v58 }
  0xc3   :  { %v130_v62 = vsel %vm129_vm8, %v541_v49, %v126_v60 }
  0xc4   :  { %v135_v63 = vsel %vm132_vm9, %v134_v61, %v130_v62 }
  0xc5   :  { %v136_v0 = vmul.f32 %v537_v31, %v135_v63  ;;  %v197_v31 = vld [vmem:[%s724_s3] sm:$0xff] }
  0xc6   :  { %224 = vmatpush.msra.mxu2 %v197_v31  ;;  %v524_v31 = vld [vmem:[%s726_s5 + $0x8] sm:$0xff] }
  0xc7   :  { %v140_v1 = vsel %vm72_vm1, %v136_v0, 0.0  ;;  %386 = vmatpush.bf16.msrb.mxu1 %v524_v31 }
  0xc8   :  { %141 = vadd.xlane.f32.xlu0 %v140_v1 }
 0x133   :  { %v139_v5 = vpop.xlane.xlu0 %138 }
 0x134   :  { %542 = vrcp.f32 %v139_v5  ;;  %v154_v15 = vand.u32 2147483648, %v139_v5  ;;  %vm148_vm11 = vweird.f32 %v139_v5  ;;  %v152_v16 = vand.u32 2147483647, %v139_v5 }
 0x136   :  { %v155_v22 = vor.u32 1.1754944e-38, %v154_v15  ;;  %vm153_vm14 = vcmp.eq.f32.partialorder %v152_v16, 8.507059e+37 }
 0x13a   :  { %v543_v7 = vpop.eup %542 }
 0x13b   :  { %v144_v8 = vmul.f32 %v543_v7, %v139_v5  ;;  %v142_v9 = vpop.xlane.xlu0 %141  ;;  %vm149_vm10 = vweird.f32 %v543_v7 }
 0x13c   :  { %544 = vrcp.f32 %v142_v9  ;;  %vm150_vm12 = vmor %vm148_vm11, %vm149_vm10  ;;  %v169_v18 = vand.u32 2147483648, %v142_v9  ;;  %v167_v20 = vand.u32 2147483647, %v142_v9  ;;  %vm163_vm15 = vweird.f32 %v142_v9 }
 0x13d   :  { %v145_v10 = vsub.f32 1.0, %v144_v8 }
 0x13e   :  { %v170_v24 = vor.u32 1.1754944e-38, %v169_v18  ;;  %vm168_vm3 = vcmp.eq.f32.partialorder %v167_v20, 8.507059e+37 }
 0x13f   :  { %v146_v11 = vmul.f32 %v543_v7, %v145_v10 }
 0x141   :  { %v147_v13 = vadd.f32 %v543_v7, %v146_v11 }
 0x142   :  { %v545_v12 = vpop.eup %544 }
 0x143   :  { %v159_v14 = vmul.f32 %v545_v12, %v142_v9  ;;  %vm164_vm13 = vweird.f32 %v545_v12  ;;  %v151_v21 = vsel %vm150_vm12, %v543_v7, %v147_v13 }
 0x144   :  { %vm165_vm2 = vmor %vm163_vm15, %vm164_vm13  ;;  %v156_v25 = vsel %vm153_vm14, %v155_v22, %v151_v21 }
 0x145   :  { %v160_v17 = vsub.f32 1.0, %v159_v14  ;;  %v157_v28 = vmul.f32 %v156_v25, %v121_v54 }
 0x147   :  { %v161_v19 = vmul.f32 %v545_v12, %v160_v17 }
 0x149   :  { %v162_v23 = vadd.f32 %v545_v12, %v161_v19 }
 0x14b   :  { %v166_v26 = vsel %vm165_vm2, %v545_v12, %v162_v23 }
 0x14c   :  { %v171_v27 = vsel %vm168_vm3, %v170_v24, %v166_v26 }
 0x14d   :  { %v172_v29 = vmul.f32 %v171_v27, %v136_v0 }
 0x14f   :  { %v173_v30 = vpack.c.bf16 %v172_v29, %v157_v28 }
 0x151   :  { %487 = vmatmul.msk.bf16.vlgmr.msra.gmra.mxu1 %vm72_vm1, %v173_v30  ;;  %v522_v30 = vld [vmem:[%s725_s4] sm:$0xff] }
 0x152   :  { %349 = vmatpush.bf16.msra.mxu3 %v522_v30 }
 0x1ce   :  { %v192_v32 = vpop.f32.mrf.mxu1 }
 0x1cf   :  { %488 = vmatmul.msk.f32.vlgmr.msra.gmra.mxu2 %vm42_vm0, %v192_v32 }
 0x1d6   :  { %v194_v33 = vpop.f32.mrf.mxu1 }
 0x1d7   :  { %489 = vmatmul.msk.f32.gmra.mxu2 %vm42_vm0, %v194_v33 }
 0x252   :  { %v226_v34 = vpop.f32.mrf.mxu2 }
 0x253   :  { %v232_v35 = vsel %vm72_vm1, %v226_v34, -inf }
 0x254   :  { %v233_v36 = vrot.slane %v232_v35, 4 }
 0x256   :  { %v234_v37 = vmax.f32 %v232_v35, %v233_v36 }
 0x258   :  { %v235_v38 = vrot.slane %v234_v37, 2 }
 0x25a   :  { %v236_v39 = vmax.f32 %v234_v37, %v235_v38  ;;  %v229_v40 = vpop.f32.mrf.mxu2 }
 0x25b   :  { %v239_v41 = vsel %vm72_vm1, %v229_v40, -inf }
 0x25c   :  { %v237_v42 = vrot.slane %v236_v39, 1  ;;  %v240_v43 = vrot.slane %v239_v41, 4 }
 0x25e   :  { %v238_v44 = vmax.f32 %v236_v39, %v237_v42  ;;  %v241_v45 = vmax.f32 %v239_v41, %v240_v43 }
 0x260   :  { %v246_v46 = vsub.f32 %v226_v34, %v238_v44  ;;  %v242_v47 = vrot.slane %v241_v45, 2 }
 0x262   :  { %v248_v48 = vmul.f32 1.442695, %v246_v46  ;;  %v243_v49 = vmax.f32 %v241_v45, %v242_v47 }
 0x264   :  { %546 = vpow2.f32 %v248_v48  ;;  %v244_v50 = vrot.slane %v243_v49, 1 }
 0x266   :  { %v245_v51 = vmax.f32 %v243_v49, %v244_v50 }
 0x268   :  { %v247_v52 = vsub.f32 %v229_v40, %v245_v51 }
 0x26a   :  { %v547_v53 = vpop.eup %546  ;;  %v250_v54 = vmul.f32 1.442695, %v247_v52 }
 0x26b   :  { %v252_v55 = vsel %vm72_vm1, %v547_v53, 0.0 }
 0x26c   :  { %v253_v56 = vrot.slane %v252_v55, 4  ;;  %548 = vpow2.f32 %v250_v54 }
 0x26e   :  { %v254_v57 = vadd.f32 %v253_v56, %v252_v55 }
 0x270   :  { %v255_v58 = vrot.slane %v254_v57, 2 }
 0x272   :  { %v549_v59 = vpop.eup %548  ;;  %v256_v60 = vadd.f32 %v255_v58, %v254_v57  ;;  %v523_v57 = vld [vmem:[%s726_s5] sm:$0xff] }
 0x273   :  { %v259_v61 = vsel %vm72_vm1, %v549_v59, 0.0  ;;  %387 = vmatpush.bf16.msrb.mxu1 %v523_v57 }
 0x274   :  { %v257_v62 = vrot.slane %v256_v60, 1  ;;  %v260_v63 = vrot.slane %v259_v61, 4 }
 0x276   :  { %v258_v0 = vadd.f32 %v257_v62, %v256_v60  ;;  %v261_v1 = vadd.f32 %v260_v63, %v259_v61  ;;  %v528_v61 = vld [vmem:[%s728_s7 + $0x18] sm:$0xff]  ;;  %v527_v62 = vld [vmem:[%s728_s7 + $0x10] sm:$0xff]  ;;  %v526_v63 = vld [vmem:[%s728_s7 + $0x8] sm:$0xff] }
 0x277   :  { %445 = vmatpush.bf16.msrb.mxu3 %v528_v61 }
 0x278   :  { %550 = vrcp.f32 %v258_v0  ;;  %v262_v2 = vrot.slane %v261_v1, 2  ;;  %v277_v9 = vand.u32 2147483648, %v258_v0  ;;  %v275_v11 = vand.u32 2147483647, %v258_v0 }
 0x279   :  { %vm271_vm5 = vweird.f32 %v258_v0 }
 0x27a   :  { %v263_v3 = vadd.f32 %v262_v2, %v261_v1  ;;  %v278_v14 = vor.u32 1.1754944e-38, %v277_v9  ;;  %vm276_vm7 = vcmp.eq.f32.partialorder %v275_v11, 8.507059e+37  ;;  %v532_v2 = vld [vmem:[%s727_s6] ss:$0 sm:$0xff]  ;;  %s584_s6 = smov [#allocation2]  }
 0x27b   :  { %446 = vmatpush.bf16.msrb.mxu3 %v527_v62  ;;  %v533_v11 = vld [vmem:[%s729_s8] ss:$0 sm:$0xff]  ;;  %s467_s0 = sshll.u32 %s584_s6, 4  ;;  %s585_s8 = smov 128   ;;  %s468_s0 = int_to_ptr.vmem [resolvable:$true] %s467_s0 }
 0x27c   :  { %v264_v4 = vrot.slane %v263_v3, 1 }
 0x27e   :  { %v551_v5 = vpop.eup %550  ;;  %v265_v6 = vadd.f32 %v264_v4, %v263_v3 }
 0x27f   :  { %v267_v7 = vmul.f32 %v551_v5, %v258_v0  ;;  %vm272_vm4 = vweird.f32 %v551_v5  ;;  %447 = vmatpush.bf16.msrb.mxu3 %v526_v63  ;;  %v525_v0 = vld [vmem:[%s728_s7] sm:$0xff] }
 0x280   :  { %552 = vrcp.f32 %v265_v6  ;;  %vm273_vm6 = vmor %vm271_vm5, %vm272_vm4  ;;  %v292_v20 = vand.u32 2147483648, %v265_v6  ;;  %v290_v23 = vand.u32 2147483647, %v265_v6  ;;  %vm286_vm9 = vweird.f32 %v265_v6 }
 0x281   :  { %v268_v8 = vsub.f32 1.0, %v267_v7 }
 0x282   :  { %v293_v25 = vor.u32 1.1754944e-38, %v292_v20  ;;  %vm291_vm11 = vcmp.eq.f32.partialorder %v290_v23, 8.507059e+37 }
 0x283   :  { %v269_v10 = vmul.f32 %v551_v5, %v268_v8  ;;  %448 = vmatpush.bf16.msrb.mxu3 %v525_v0 }
 0x285   :  { %v270_v12 = vadd.f32 %v551_v5, %v269_v10 }
 0x286   :  { %v553_v13 = vpop.eup %552 }
 0x287   :  { %v274_v15 = vsel %vm273_vm6, %v551_v5, %v270_v12  ;;  %v282_v16 = vmul.f32 %v553_v13, %v265_v6  ;;  %vm287_vm8 = vweird.f32 %v553_v13 }
 0x288   :  { %v279_v17 = vsel %vm276_vm7, %v278_v14, %v274_v15  ;;  %vm288_vm10 = vmor %vm286_vm9, %vm287_vm8  ;;  %vm437_vm7 = vcmask 523264  }
 0x289   :  { %v280_v18 = vmul.f32 %v547_v53, %v279_v17  ;;  %v283_v19 = vsub.f32 1.0, %v282_v16 }
 0x28b   :  { %v296_v21 = vsel %vm72_vm1, %v280_v18, 0.0  ;;  %v284_v22 = vmul.f32 %v553_v13, %v283_v19 }
 0x28c   :  { %297 = vadd.xlane.f32.xlu1 %v296_v21 }
 0x28d   :  { %v285_v24 = vadd.f32 %v553_v13, %v284_v22 }
 0x28f   :  { %v289_v26 = vsel %vm288_vm10, %v553_v13, %v285_v24 }
 0x290   :  { %v294_v27 = vsel %vm291_vm11, %v293_v25, %v289_v26 }
 0x291   :  { %v295_v28 = vmul.f32 %v549_v59, %v294_v27 }
 0x293   :  { %v299_v29 = vsel %vm72_vm1, %v295_v28, 0.0 }
 0x294   :  { %300 = vadd.xlane.f32.xlu1 %v299_v29 }
 0x2ff   :  { %v298_v32 = vpop.xlane.xlu1 %297 }
 0x300   :  { %554 = vrcp.f32 %v298_v32  ;;  %v313_v41 = vand.u32 2147483648, %v298_v32  ;;  %vm307_vm13 = vweird.f32 %v298_v32  ;;  %v311_v42 = vand.u32 2147483647, %v298_v32 }
 0x302   :  { %v314_v48 = vor.u32 1.1754944e-38, %v313_v41  ;;  %vm312_vm2 = vcmp.eq.f32.partialorder %v311_v42, 8.507059e+37 }
 0x306   :  { %v555_v33 = vpop.eup %554 }
 0x307   :  { %v303_v34 = vmul.f32 %v555_v33, %v298_v32  ;;  %v301_v35 = vpop.xlane.xlu1 %300  ;;  %vm308_vm12 = vweird.f32 %v555_v33 }
 0x308   :  { %556 = vrcp.f32 %v301_v35  ;;  %vm309_vm14 = vmor %vm307_vm13, %vm308_vm12  ;;  %v328_v44 = vand.u32 2147483648, %v301_v35  ;;  %v326_v46 = vand.u32 2147483647, %v301_v35  ;;  %vm322_vm3 = vweird.f32 %v301_v35 }
 0x309   :  { %v304_v36 = vsub.f32 1.0, %v303_v34 }
 0x30a   :  { %v329_v50 = vor.u32 1.1754944e-38, %v328_v44  ;;  %vm327_vm5 = vcmp.eq.f32.partialorder %v326_v46, 8.507059e+37 }
 0x30b   :  { %v305_v37 = vmul.f32 %v555_v33, %v304_v36 }
 0x30d   :  { %v306_v39 = vadd.f32 %v555_v33, %v305_v37 }
 0x30e   :  { %v557_v38 = vpop.eup %556 }
 0x30f   :  { %v318_v40 = vmul.f32 %v557_v38, %v301_v35  ;;  %vm323_vm15 = vweird.f32 %v557_v38  ;;  %v310_v47 = vsel %vm309_vm14, %v555_v33, %v306_v39 }
 0x310   :  { %vm324_vm4 = vmor %vm322_vm3, %vm323_vm15  ;;  %v315_v51 = vsel %vm312_vm2, %v314_v48, %v310_v47 }
 0x311   :  { %v319_v43 = vsub.f32 1.0, %v318_v40  ;;  %v316_v54 = vmul.f32 %v315_v51, %v280_v18 }
 0x313   :  { %v320_v45 = vmul.f32 %v557_v38, %v319_v43 }
 0x315   :  { %v321_v49 = vadd.f32 %v557_v38, %v320_v45 }
 0x317   :  { %v325_v52 = vsel %vm324_vm4, %v557_v38, %v321_v49 }
 0x318   :  { %v330_v53 = vsel %vm327_vm5, %v329_v50, %v325_v52 }
 0x319   :  { %v331_v55 = vmul.f32 %v330_v53, %v295_v28 }
 0x31b   :  { %v332_v56 = vpack.c.bf16 %v331_v55, %v316_v54 }
 0x31d   :  { %494 = vmatmul.msk.bf16.vlgmr.msra.gmra.mxu3 %vm72_vm1, %v332_v56 }
 0x3a0   :  { %v351_v58 = vpop.f32.mrf.mxu3 }
 0x3a8   :  { %v353_v59 = vpop.f32.mrf.mxu3 }
 0x3a9   :  { %v356_v60 = vpack.c.bf16 %v353_v59, %v351_v58 }
 0x3ab   :  { %503 = vmatmul.msk.bf16.vlgmr.msrb.gmra.mxu1 %vm42_vm0, %v356_v60 }
 0x428   :  { %v389_v1 = vpop.f32.mrf.mxu1 }
 0x429   :  { %v390_v3 = vadd.f32 %v532_v2, %v389_v1 }
 0x42b   :  { %v396_v5 = vmul.f32 0.3, %v390_v3  ;;  %vm394_vm1 = vcmp.ge.f32.partialorder %v390_v3, 0.0 }
 0x42d   :  { %v398_v8 = vsel %vm394_vm1, %v390_v3, %v396_v5 }
 0x430   :  { %v391_v4 = vpop.f32.mrf.mxu1 }
 0x431   :  { %v392_v6 = vadd.f32 %v532_v2, %v391_v4 }
 0x433   :  { %vm395_vm6 = vcmp.ge.f32.partialorder %v392_v6, 0.0  ;;  %v397_v7 = vmul.f32 0.3, %v392_v6 }
 0x435   :  { %v399_v9 = vsel %vm395_vm6, %v392_v6, %v397_v7 }
 0x436   :  { %v400_v10 = vpack.c.bf16 %v399_v9, %v398_v8 }
 0x438   :  { %520 = vmatmul.msk.bf16.vlgmr.msrb.gmra.mxu3 %vm437_vm7, %v400_v10 }
 0x4bb   :  { %v450_v12 = vpop.f32.mrf.mxu3 }
 0x4bc   :  { %v451_v13 = vadd.f32 %v533_v11, %v450_v12 }
 0x4be   :  { %vm455_vm8 = vcmp.ge.f32.partialorder %v451_v13, 0.0  ;;  %v457_v14 = vmul.f32 0.3, %v451_v13 }
 0x4c0   :  { %v459_v15 = vsel %vm455_vm8, %v451_v13, %v457_v14 }
 0x4c1   :  { %461 = vst.msk [vmem:[#allocation2] sm:$0xff] %vm42_vm0, %v459_v15 }
 0x4c3   :  { %v452_v16 = vpop.f32.mrf.mxu3 }
 0x4c4   :  { %v453_v17 = vadd.f32 %v533_v11, %v452_v16 }
 0x4c6   :  { %vm456_vm9 = vcmp.ge.f32.partialorder %v453_v17, 0.0  ;;  %v458_v18 = vmul.f32 0.3, %v453_v17 }
 0x4c8   :  { %v460_v19 = vsel %vm456_vm9, %v453_v17, %v458_v18 }
 0x4c9   :  { %462 = vst.msk [vmem:[#allocation2 + $0x8] sm:$0xff] %vm42_vm0, %v460_v19 }
 0x4ca   :  { %475 = dma.vmem_to_hbm [thread:$0]  %s468_s0, 256, %s470_s22, [#allocation3], %s585_s8, %s585_s8, %s586_s23  }
 0x4cb   :  { %582 = dma.done.wait [#allocation3], 256  }
 0x4cc   :  { %583 = vsyncadd [#allocation3], 4294967040 }
 0x4cd   :  { %480 = vsyncpa [#allocation3], 1 }

</bundles_post_ra>
